<compile_context>
chip_gen: v7x
topology: tpu7x:2x2x1
jax: 0.10.0
libtpu: 0.0.40
codegen_flags: <defaults>
</compile_context>

<pallas_src>
import jax
import jax.numpy as jnp
from jax.experimental import pallas as pl
from jax.experimental.pallas import tpu as pltpu


def _front_pad(W):
    # 128-aligned lane offset for the main tile so its store needs no lane shift;
    # must be >= W + 1 so the (-1,-1) tap slice start stays in-bounds.
    return (W // 128 + 1) * 128


def _pick_block_h(H, W, Cin, Cout, budget_bytes=6 * 1024 * 1024):
    """Largest row-tile TH dividing H with TH*W a multiple of 128 (lane-dense
    blocks) that fits a small VMEM budget; prefer >=2 tiles for megacore."""
    front = _front_pad(W)

    def est(th):
        thw = th * W
        return 4 * (2 * Cin * thw            # double-buffered input block
                    + 2 * Cout * thw         # double-buffered output block
                    + 4 * Cin * W            # halo blocks
                    + Cin * (thw + 2 * front)  # staging scratch
                    + (Cin + Cout) * thw)    # live acc / result values

    cands = [th for th in range(1, H + 1) if H % th == 0]
    good = [th for th in cands if (th * W) % 128 == 0 and est(th) <= budget_bytes]
    if good:
        multi = [th for th in good if H // th >= 2]
        return max(multi) if multi else max(good)
    # Fallback: one full-image tile (block dims equal full array dims -> always legal).
    return H


def _make_kernel(TH, W, FRONT):
    THW = TH * W

    def kernel(wdw_ref, wpw_ref, shift_ref, mask_ref, x_ref, top_ref, bot_ref,
               out_ref, xbuf):
        # wdw_ref  : (Cin, 9)      depthwise taps, column k = ky*3+kx
        # wpw_ref  : (Cout, Cin)   pointwise weights with BN scale folded in
        # shift_ref: (Cout, 1)     folded BN shift
        # mask_ref : (2, TH*W)     W-boundary masks for the dx=-1 / dx=+1 taps
        # x_ref    : (1, Cin, TH*W)   main row tile (H*W flattened on lanes)
        # top_ref  : (1, 1, Cin, W)   row above the tile (zeros at image border)
        # bot_ref  : (1, 1, Cin, W)   row below the tile (zeros at image border)
        # out_ref  : (1, Cout, TH*W)
        # xbuf     : VMEM (Cin, 2*FRONT + TH*W) staging buffer with halo
        Cin = x_ref.shape[1]

        # --- assemble the (TH+2)-row haloed tile on the lane axis -------------
        xbuf[:, FRONT - W:FRONT] = top_ref[0, 0]
        xbuf[:, FRONT:FRONT + THW] = x_ref[0]
        xbuf[:, FRONT + THW:FRONT + THW + W] = bot_ref[0, 0]
        # The two corner lanes read (and masked) by the (-1,-1)/(+1,+1) taps are
        # never DMA'd; zero them so stale NaN/Inf VMEM cannot leak through a 0*x.
        zcol = jnp.zeros((Cin, 1), jnp.float32)
        xbuf[:, FRONT - W - 1:FRONT - W] = zcol
        xbuf[:, FRONT + THW + W:FRONT + THW + W + 1] = zcol

        # --- depthwise 3x3: 9 lane-shifted multiply-adds, lanes = spatial -----
        mask_l = mask_ref[0:1, :]   # zero where w == 0     (dx = -1)
        mask_r = mask_ref[1:2, :]   # zero where w == W - 1 (dx = +1)
        acc = jnp.zeros((Cin, THW), jnp.float32)
        for ky in range(3):
            for kx in range(3):
                s = FRONT + (ky - 1) * W + (kx - 1)
                k = ky * 3 + kx
                tap = xbuf[:, s:s + THW] * wdw_ref[:, k:k + 1]
                if kx == 0:
                    tap = tap * mask_l
                elif kx == 2:
                    tap = tap * mask_r
                acc = acc + tap

        # --- pointwise 1x1 (BN scale pre-folded) on the MXU, + shift + ReLU ---
        y = jnp.dot(wpw_ref[...], acc, preferred_element_type=jnp.float32)
        y = jnp.maximum(y + shift_ref[...], 0.0)
        out_ref[0] = y.astype(out_ref.dtype)

    return kernel


def dwconv_bn_relu(x_nchw, w_dw, w_pw, gamma, beta, running_mean, running_var,
                   eps=1e-5, block_h=None):
    """Fused DepthWiseConv(3x3, pad=1) -> 1x1 conv -> BatchNorm2d(eval) -> ReLU.

    x_nchw : (N, Cin, H, W) float32        (PyTorch NCHW, returned as NCHW)
    w_dw   : (Cin, 1, 3, 3)                (PyTorch depthwise conv weight)
    w_pw   : (Cout, Cin, 1, 1)             (PyTorch pointwise conv weight)
    gamma, beta, running_mean, running_var : (Cout,)
    """
    N, Cin, H, W = x_nchw.shape
    Cout = w_pw.shape[0]

    TH = _pick_block_h(H, W, Cin, Cout) if block_h is None else block_h
    assert H % TH == 0, "block_h must divide H"
    nt = H // TH
    THW = TH * W
    FRONT = _front_pad(W)
    L = 2 * FRONT + THW

    x = x_nchw.astype(jnp.float32)
    x_flat = x.reshape(N, Cin, H * W)                       # free (contiguous view)

    # Halo rows (row above / below each tile); image borders are zeros.
    # These gathers only touch ~2/TH of x (vs. a full-tensor jnp.pad pass).
    if nt > 1:
        zrow = jnp.zeros((N, Cin, 1, W), jnp.float32)
        top_rows = x[:, :, TH - 1:H - 1:TH, :]              # rows TH-1, 2TH-1, ...
        bot_rows = x[:, :, TH:H:TH, :]                      # rows TH, 2TH, ...
        tops = jnp.concatenate([zrow, top_rows], axis=2)    # (N, Cin, nt, W)
        bots = jnp.concatenate([bot_rows, zrow], axis=2)
    else:
        tops = jnp.zeros((N, Cin, 1, W), jnp.float32)
        bots = jnp.zeros((N, Cin, 1, W), jnp.float32)
    tops = jnp.transpose(tops, (0, 2, 1, 3))                # (N, nt, Cin, W)
    bots = jnp.transpose(bots, (0, 2, 1, 3))

    # Fold BatchNorm (eval mode): scale goes into the pointwise weights.
    scale = (gamma / jnp.sqrt(running_var.astype(jnp.float32) + eps)).astype(jnp.float32)
    shift = (beta - running_mean * scale).reshape(Cout, 1).astype(jnp.float32)
    wpw_f = (w_pw.reshape(Cout, Cin).astype(jnp.float32) * scale[:, None])
    wdw_k = w_dw.reshape(Cin, 9).astype(jnp.float32)        # column k = ky*3 + kx

    # W-boundary masks for the shifted taps (precomputed, lane-dense constants).
    pos = jnp.arange(THW, dtype=jnp.int32) % W
    masks = jnp.stack([(pos != 0).astype(jnp.float32),
                       (pos != W - 1).astype(jnp.float32)], axis=0)   # (2, THW)

    kernel = _make_kernel(TH, W, FRONT)

    out_flat = pl.pallas_call(
        kernel,
        out_shape=jax.ShapeDtypeStruct((N, Cout, H * W), jnp.float32),
        grid_spec=pltpu.PrefetchScalarGridSpec(
            num_scalar_prefetch=0,
            grid=(N, nt),
            in_specs=[
                pl.BlockSpec((Cin, 9), lambda n, t: (0, 0)),          # wdw
                pl.BlockSpec((Cout, Cin), lambda n, t: (0, 0)),       # wpw (BN-folded)
                pl.BlockSpec((Cout, 1), lambda n, t: (0, 0)),         # shift
                pl.BlockSpec((2, THW), lambda n, t: (0, 0)),          # masks
                pl.BlockSpec((1, Cin, THW), lambda n, t: (n, 0, t)),  # main row tile
                pl.BlockSpec((1, 1, Cin, W), lambda n, t: (n, t, 0, 0)),  # top halo
                pl.BlockSpec((1, 1, Cin, W), lambda n, t: (n, t, 0, 0)),  # bottom halo
            ],
            out_specs=pl.BlockSpec((1, Cout, THW), lambda n, t: (n, 0, t)),
            scratch_shapes=[pltpu.VMEM((Cin, L), jnp.float32)],
        ),
        compiler_params=pltpu.CompilerParams(
            dimension_semantics=("parallel", "parallel"),
            # above the 16/32 MiB scoped defaults (v5e/v6e), under v7x's 64 MiB VMEM
            vmem_limit_bytes=48 * 1024 * 1024,
        ),
    )(wdw_k, wpw_f, shift, masks, x_flat, tops, bots)

    return out_flat.reshape(N, Cout, H, W)                  # free (contiguous view)


def _reference(x, w_dw, w_pw, gamma, beta, mean, var, eps=1e-5):
    """Pure-JAX NCHW reference of the PyTorch module (eval-mode BN)."""
    N, Cin, H, W = x.shape
    xp = jnp.pad(x, ((0, 0), (0, 0), (1, 1), (1, 1)))
    dw = jnp.zeros_like(x)
    for ky in range(3):
        for kx in range(3):
            dw = dw + xp[:, :, ky:ky + H, kx:kx + W] * w_dw[:, 0, ky, kx][None, :, None, None]
    pw = jnp.einsum('nihw,oi->nohw', dw, w_pw[:, :, 0, 0])
    inv = 1.0 / jnp.sqrt(var + eps)
    y = (pw - mean[None, :, None, None]) * (gamma * inv)[None, :, None, None] \
        + beta[None, :, None, None]
    return jnp.maximum(y, 0.0)


if __name__ == "__main__":
    N, Cin, Cout, H, W = 2, 4, 8, 16, 16

    key = jax.random.PRNGKey(0)
    kx_, kdw, kpw, kg, kb, km, kv = jax.random.split(key, 7)

    x = jax.random.normal(kx_, (N, Cin, H, W), dtype=jnp.float32)
    # PyTorch-shaped parameters.
    w_dw = 0.2 * jax.random.normal(kdw, (Cin, 1, 3, 3), dtype=jnp.float32)
    w_pw = 0.2 * jax.random.normal(kpw, (Cout, Cin, 1, 1), dtype=jnp.float32)
    gamma = 1.0 + 0.1 * jax.random.normal(kg, (Cout,), dtype=jnp.float32)
    beta = 0.1 * jax.random.normal(kb, (Cout,), dtype=jnp.float32)
    running_mean = 0.1 * jax.random.normal(km, (Cout,), dtype=jnp.float32)
    running_var = 1.0 + 0.1 * jax.nn.softplus(
        jax.random.normal(kv, (Cout,), dtype=jnp.float32))

    out = dwconv_bn_relu(x, w_dw, w_pw, gamma, beta, running_mean, running_var)
    out = jax.block_until_ready(out)

    ref = _reference(x, w_dw, w_pw, gamma, beta, running_mean, running_var)
    assert out.shape == (N, Cout, H, W)
    assert jnp.allclose(out, ref, rtol=1e-3, atol=1e-3)

    print("KERNEL_OK")
</pallas_src>

<mosaic_0001>
module attributes {stable_mosaic.version = 11 : i64} {
  func.func @kernel(%arg0: i32, %arg1: i32, %arg2: memref<4x9xf32, #tpu.memory_space<vmem>>, %arg3: memref<8x4xf32, #tpu.memory_space<vmem>>, %arg4: memref<8x1xf32, #tpu.memory_space<vmem>>, %arg5: memref<2x128xf32, #tpu.memory_space<vmem>>, %arg6: memref<1x4x128xf32, #tpu.memory_space<vmem>>, %arg7: memref<1x1x4x16xf32, #tpu.memory_space<vmem>>, %arg8: memref<1x1x4x16xf32, #tpu.memory_space<vmem>>, %arg9: memref<1x8x128xf32, #tpu.memory_space<vmem>>, %arg10: memref<4x384xf32, #tpu.memory_space<vmem>>) attributes {dimension_semantics = [#tpu.dimension_semantics<parallel>, #tpu.dimension_semantics<parallel>], iteration_bounds = array<i64: 2, 2>, scalar_prefetch = 0 : i64, scratch_operands = 1 : i64, tpu.core_type = #tpu.core_type<tc>, window_params = [{pipeline_mode = #tpu.pipeline_mode<synchronous>, transform_indices = @transform_0, window_bounds = array<i64: 4, 9>}, {pipeline_mode = #tpu.pipeline_mode<synchronous>, transform_indices = @transform_1, window_bounds = array<i64: 8, 4>}, {pipeline_mode = #tpu.pipeline_mode<synchronous>, transform_indices = @transform_2, window_bounds = array<i64: 8, 1>}, {pipeline_mode = #tpu.pipeline_mode<synchronous>, transform_indices = @transform_3, window_bounds = array<i64: 2, 128>}, {transform_indices = @transform_4, window_bounds = array<i64: 1, 4, 128>}, {transform_indices = @transform_5, window_bounds = array<i64: 1, 1, 4, 16>}, {transform_indices = @transform_6, window_bounds = array<i64: 1, 1, 4, 16>}, {transform_indices = @transform_7, window_bounds = array<i64: 1, 8, 128>}]} {
    %c0 = arith.constant 0 : index
    %c0_0 = arith.constant 0 : index
    %c0_1 = arith.constant 0 : index
    %c0_2 = arith.constant 0 : index
    %0 = vector.load %arg7[%c0, %c0_0, %c0_1, %c0_2] : memref<1x1x4x16xf32, #tpu.memory_space<vmem>>, vector<1x1x4x16xf32>
    %1 = vector.shape_cast %0 : vector<1x1x4x16xf32> to vector<4x16xf32>
    %c0_3 = arith.constant 0 : index
    %c112 = arith.constant 112 : index
    %2 = vector.load %arg10[%c0_3, %c112] : memref<4x384xf32, #tpu.memory_space<vmem>>, vector<4x16xf32>
    tpu.vector_store %arg10[%c0_3, %c112], %1 {strides = array<i32>} : memref<4x384xf32, #tpu.memory_space<vmem>>, vector<4x16xf32>,
    %c0_4 = arith.constant 0 : index
    %c0_5 = arith.constant 0 : index
    %c0_6 = arith.constant 0 : index
    %3 = vector.load %arg6[%c0_4, %c0_5, %c0_6] : memref<1x4x128xf32, #tpu.memory_space<vmem>>, vector<1x4x128xf32>
    %4 = vector.shape_cast %3 : vector<1x4x128xf32> to vector<4x128xf32>
    %c0_7 = arith.constant 0 : index
    %c128 = arith.constant 128 : index
    %5 = vector.load %arg10[%c0_7, %c128] : memref<4x384xf32, #tpu.memory_space<vmem>>, vector<4x128xf32>
    tpu.vector_store %arg10[%c0_7, %c128], %4 {strides = array<i32>} : memref<4x384xf32, #tpu.memory_space<vmem>>, vector<4x128xf32>,
    %c0_8 = arith.constant 0 : index
    %c0_9 = arith.constant 0 : index
    %c0_10 = arith.constant 0 : index
    %c0_11 = arith.constant 0 : index
    %6 = vector.load %arg8[%c0_8, %c0_9, %c0_10, %c0_11] : memref<1x1x4x16xf32, #tpu.memory_space<vmem>>, vector<1x1x4x16xf32>
    %7 = vector.shape_cast %6 : vector<1x1x4x16xf32> to vector<4x16xf32>
    %c0_12 = arith.constant 0 : index
    %c256 = arith.constant 256 : index
    %8 = vector.load %arg10[%c0_12, %c256] : memref<4x384xf32, #tpu.memory_space<vmem>>, vector<4x16xf32>
    tpu.vector_store %arg10[%c0_12, %c256], %7 {strides = array<i32>} : memref<4x384xf32, #tpu.memory_space<vmem>>, vector<4x16xf32>,
    %cst = arith.constant 0.000000e+00 : f32
    %9 = vector.broadcast %cst : f32 to vector<4x1xf32>
    %c0_13 = arith.constant 0 : index
    %c111 = arith.constant 111 : index
    %10 = vector.load %arg10[%c0_13, %c111] : memref<4x384xf32, #tpu.memory_space<vmem>>, vector<4x1xf32>
    tpu.vector_store %arg10[%c0_13, %c111], %9 {strides = array<i32>} : memref<4x384xf32, #tpu.memory_space<vmem>>, vector<4x1xf32>,
    %c0_14 = arith.constant 0 : index
    %c272 = arith.constant 272 : index
    %11 = vector.load %arg10[%c0_14, %c272] : memref<4x384xf32, #tpu.memory_space<vmem>>, vector<4x1xf32>
    tpu.vector_store %arg10[%c0_14, %c272], %9 {strides = array<i32>} : memref<4x384xf32, #tpu.memory_space<vmem>>, vector<4x1xf32>,
    %c0_15 = arith.constant 0 : index
    %c0_16 = arith.constant 0 : index
    %12 = vector.load %arg5[%c0_15, %c0_16] : memref<2x128xf32, #tpu.memory_space<vmem>>, vector<1x128xf32>
    %c1 = arith.constant 1 : index
    %c0_17 = arith.constant 0 : index
    %13 = vector.load %arg5[%c1, %c0_17] : memref<2x128xf32, #tpu.memory_space<vmem>>, vector<1x128xf32>
    %cst_18 = arith.constant 0.000000e+00 : f32
    %14 = vector.broadcast %cst_18 : f32 to vector<4x128xf32>
    %c0_19 = arith.constant 0 : index
    %c111_20 = arith.constant 111 : index
    %15 = vector.load %arg10[%c0_19, %c111_20] : memref<4x384xf32, #tpu.memory_space<vmem>>, vector<4x128xf32>
    %c0_21 = arith.constant 0 : index
    %c0_22 = arith.constant 0 : index
    %16 = vector.load %arg2[%c0_21, %c0_22] : memref<4x9xf32, #tpu.memory_space<vmem>>, vector<4x1xf32>
    %17 = vector.broadcast %16 : vector<4x1xf32> to vector<4x128xf32>
    %18 = arith.mulf %15, %17 : vector<4x128xf32>
    %19 = vector.broadcast %12 : vector<1x128xf32> to vector<4x128xf32>
    %20 = arith.mulf %18, %19 : vector<4x128xf32>
    %21 = arith.addf %14, %20 : vector<4x128xf32>
    %c0_23 = arith.constant 0 : index
    %c112_24 = arith.constant 112 : index
    %22 = vector.load %arg10[%c0_23, %c112_24] : memref<4x384xf32, #tpu.memory_space<vmem>>, vector<4x128xf32>
    %c0_25 = arith.constant 0 : index
    %c1_26 = arith.constant 1 : index
    %23 = vector.load %arg2[%c0_25, %c1_26] : memref<4x9xf32, #tpu.memory_space<vmem>>, vector<4x1xf32>
    %24 = vector.broadcast %23 : vector<4x1xf32> to vector<4x128xf32>
    %25 = arith.mulf %22, %24 : vector<4x128xf32>
    %26 = arith.addf %21, %25 : vector<4x128xf32>
    %c0_27 = arith.constant 0 : index
    %c113 = arith.constant 113 : index
    %27 = vector.load %arg10[%c0_27, %c113] : memref<4x384xf32, #tpu.memory_space<vmem>>, vector<4x128xf32>
    %c0_28 = arith.constant 0 : index
    %c2 = arith.constant 2 : index
    %28 = vector.load %arg2[%c0_28, %c2] : memref<4x9xf32, #tpu.memory_space<vmem>>, vector<4x1xf32>
    %29 = vector.broadcast %28 : vector<4x1xf32> to vector<4x128xf32>
    %30 = arith.mulf %27, %29 : vector<4x128xf32>
    %31 = vector.broadcast %13 : vector<1x128xf32> to vector<4x128xf32>
    %32 = arith.mulf %30, %31 : vector<4x128xf32>
    %33 = arith.addf %26, %32 : vector<4x128xf32>
    %c0_29 = arith.constant 0 : index
    %c127 = arith.constant 127 : index
    %34 = vector.load %arg10[%c0_29, %c127] : memref<4x384xf32, #tpu.memory_space<vmem>>, vector<4x128xf32>
    %c0_30 = arith.constant 0 : index
    %c3 = arith.constant 3 : index
    %35 = vector.load %arg2[%c0_30, %c3] : memref<4x9xf32, #tpu.memory_space<vmem>>, vector<4x1xf32>
    %36 = vector.broadcast %35 : vector<4x1xf32> to vector<4x128xf32>
    %37 = arith.mulf %34, %36 : vector<4x128xf32>
    %38 = vector.broadcast %12 : vector<1x128xf32> to vector<4x128xf32>
    %39 = arith.mulf %37, %38 : vector<4x128xf32>
    %40 = arith.addf %33, %39 : vector<4x128xf32>
    %c0_31 = arith.constant 0 : index
    %c128_32 = arith.constant 128 : index
    %41 = vector.load %arg10[%c0_31, %c128_32] : memref<4x384xf32, #tpu.memory_space<vmem>>, vector<4x128xf32>
    %c0_33 = arith.constant 0 : index
    %c4 = arith.constant 4 : index
    %42 = vector.load %arg2[%c0_33, %c4] : memref<4x9xf32, #tpu.memory_space<vmem>>, vector<4x1xf32>
    %43 = vector.broadcast %42 : vector<4x1xf32> to vector<4x128xf32>
    %44 = arith.mulf %41, %43 : vector<4x128xf32>
    %45 = arith.addf %40, %44 : vector<4x128xf32>
    %c0_34 = arith.constant 0 : index
    %c129 = arith.constant 129 : index
    %46 = vector.load %arg10[%c0_34, %c129] : memref<4x384xf32, #tpu.memory_space<vmem>>, vector<4x128xf32>
    %c0_35 = arith.constant 0 : index
    %c5 = arith.constant 5 : index
    %47 = vector.load %arg2[%c0_35, %c5] : memref<4x9xf32, #tpu.memory_space<vmem>>, vector<4x1xf32>
    %48 = vector.broadcast %47 : vector<4x1xf32> to vector<4x128xf32>
    %49 = arith.mulf %46, %48 : vector<4x128xf32>
    %50 = vector.broadcast %13 : vector<1x128xf32> to vector<4x128xf32>
    %51 = arith.mulf %49, %50 : vector<4x128xf32>
    %52 = arith.addf %45, %51 : vector<4x128xf32>
    %c0_36 = arith.constant 0 : index
    %c143 = arith.constant 143 : index
    %53 = vector.load %arg10[%c0_36, %c143] : memref<4x384xf32, #tpu.memory_space<vmem>>, vector<4x128xf32>
    %c0_37 = arith.constant 0 : index
    %c6 = arith.constant 6 : index
    %54 = vector.load %arg2[%c0_37, %c6] : memref<4x9xf32, #tpu.memory_space<vmem>>, vector<4x1xf32>
    %55 = vector.broadcast %54 : vector<4x1xf32> to vector<4x128xf32>
    %56 = arith.mulf %53, %55 : vector<4x128xf32>
    %57 = vector.broadcast %12 : vector<1x128xf32> to vector<4x128xf32>
    %58 = arith.mulf %56, %57 : vector<4x128xf32>
    %59 = arith.addf %52, %58 : vector<4x128xf32>
    %c0_38 = arith.constant 0 : index
    %c144 = arith.constant 144 : index
    %60 = vector.load %arg10[%c0_38, %c144] : memref<4x384xf32, #tpu.memory_space<vmem>>, vector<4x128xf32>
    %c0_39 = arith.constant 0 : index
    %c7 = arith.constant 7 : index
    %61 = vector.load %arg2[%c0_39, %c7] : memref<4x9xf32, #tpu.memory_space<vmem>>, vector<4x1xf32>
    %62 = vector.broadcast %61 : vector<4x1xf32> to vector<4x128xf32>
    %63 = arith.mulf %60, %62 : vector<4x128xf32>
    %64 = arith.addf %59, %63 : vector<4x128xf32>
    %c0_40 = arith.constant 0 : index
    %c145 = arith.constant 145 : index
    %65 = vector.load %arg10[%c0_40, %c145] : memref<4x384xf32, #tpu.memory_space<vmem>>, vector<4x128xf32>
    %c0_41 = arith.constant 0 : index
    %c8 = arith.constant 8 : index
    %66 = vector.load %arg2[%c0_41, %c8] : memref<4x9xf32, #tpu.memory_space<vmem>>, vector<4x1xf32>
    %67 = vector.broadcast %66 : vector<4x1xf32> to vector<4x128xf32>
    %68 = arith.mulf %65, %67 : vector<4x128xf32>
    %69 = vector.broadcast %13 : vector<1x128xf32> to vector<4x128xf32>
    %70 = arith.mulf %68, %69 : vector<4x128xf32>
    %71 = arith.addf %64, %70 : vector<4x128xf32>
    %c0_42 = arith.constant 0 : index
    %c0_43 = arith.constant 0 : index
    %72 = vector.load %arg3[%c0_42, %c0_43] : memref<8x4xf32, #tpu.memory_space<vmem>>, vector<8x4xf32>
    %cst_44 = arith.constant dense<0.000000e+00> : vector<8x128xf32>
    %73 = tpu.matmul %72, %71, %cst_44 {dimension_numbers = #tpu.dot_dimension_numbers<[1], [0], [0], [1], [0, 0, 1, 1], [], []>} : vector<8x4xf32>, vector<4x128xf32>, vector<8x128xf32> -> vector<8x128xf32>
    %c0_45 = arith.constant 0 : index
    %c0_46 = arith.constant 0 : index
    %74 = vector.load %arg4[%c0_45, %c0_46] : memref<8x1xf32, #tpu.memory_space<vmem>>, vector<8x1xf32>
    %75 = vector.broadcast %74 : vector<8x1xf32> to vector<8x128xf32>
    %76 = arith.addf %73, %75 : vector<8x128xf32>
    %cst_47 = arith.constant 0.000000e+00 : f32
    %77 = vector.broadcast %cst_47 : f32 to vector<8x128xf32>
    %78 = arith.maximumf %76, %77 : vector<8x128xf32>
    %c0_48 = arith.constant 0 : index
    %c0_49 = arith.constant 0 : index
    %c0_50 = arith.constant 0 : index
    %79 = vector.load %arg9[%c0_48, %c0_49, %c0_50] : memref<1x8x128xf32, #tpu.memory_space<vmem>>, vector<1x8x128xf32>
    %80 = vector.shape_cast %79 : vector<1x8x128xf32> to vector<8x128xf32>
    %81 = vector.shape_cast %78 : vector<8x128xf32> to vector<1x8x128xf32>
    tpu.vector_store %arg9[%c0_48, %c0_49, %c0_50], %81 {strides = array<i32>} : memref<1x8x128xf32, #tpu.memory_space<vmem>>, vector<1x8x128xf32>,
    return
  }
  func.func @transform_0(%arg0: i32, %arg1: i32) -> (i32, i32) {
    %c0_i32 = arith.constant 0 : i32
    %c0_i32_0 = arith.constant 0 : i32
    %c0_i32_1 = arith.constant 0 : i32
    return %c0_i32, %c0_i32_0 : i32, i32
  }
  func.func @transform_1(%arg0: i32, %arg1: i32) -> (i32, i32) {
    %c0_i32 = arith.constant 0 : i32
    %c0_i32_0 = arith.constant 0 : i32
    %c0_i32_1 = arith.constant 0 : i32
    return %c0_i32, %c0_i32_0 : i32, i32
  }
  func.func @transform_2(%arg0: i32, %arg1: i32) -> (i32, i32) {
    %c0_i32 = arith.constant 0 : i32
    %c0_i32_0 = arith.constant 0 : i32
    %c0_i32_1 = arith.constant 0 : i32
    return %c0_i32, %c0_i32_0 : i32, i32
  }
  func.func @transform_3(%arg0: i32, %arg1: i32) -> (i32, i32) {
    %c0_i32 = arith.constant 0 : i32
    %c0_i32_0 = arith.constant 0 : i32
    %c0_i32_1 = arith.constant 0 : i32
    return %c0_i32, %c0_i32_0 : i32, i32
  }
  func.func @transform_4(%arg0: i32, %arg1: i32) -> (i32, i32, i32) {
    %c0_i32 = arith.constant 0 : i32
    %c0_i32_0 = arith.constant 0 : i32
    return %arg0, %c0_i32, %arg1 : i32, i32, i32
  }
  func.func @transform_5(%arg0: i32, %arg1: i32) -> (i32, i32, i32, i32) {
    %c0_i32 = arith.constant 0 : i32
    %c0_i32_0 = arith.constant 0 : i32
    %c0_i32_1 = arith.constant 0 : i32
    return %arg0, %arg1, %c0_i32, %c0_i32_0 : i32, i32, i32, i32
  }
  func.func @transform_6(%arg0: i32, %arg1: i32) -> (i32, i32, i32, i32) {
    %c0_i32 = arith.constant 0 : i32
    %c0_i32_0 = arith.constant 0 : i32
    %c0_i32_1 = arith.constant 0 : i32
    return %arg0, %arg1, %c0_i32, %c0_i32_0 : i32, i32, i32, i32
  }
  func.func @transform_7(%arg0: i32, %arg1: i32) -> (i32, i32, i32) {
    %c0_i32 = arith.constant 0 : i32
    %c0_i32_0 = arith.constant 0 : i32
    return %arg0, %c0_i32, %arg1 : i32, i32, i32
  }
}

</mosaic_0001>

<bundles_post_ra>
// kernel: tpu_custom_call.1
= control target key start
LH: loop header
LB: loop body
LE: loop exit
PB: predicated region body
PF: predicated region fallthrough
CT: control target
= control target key end

     0   :  { %s1578_s0 = inlined_call_operand.hbm [shape: f32[4,9], index: 0, kind: input, shape index: {}]   ;;  %s1579_s1 = inlined_call_operand.vmem [shape: f32[8,4], index: 1, kind: input, shape index: {}]   ;;  %s1580_s2 = inlined_call_operand.vmem [shape: f32[8,1], index: 2, kind: input, shape index: {}]   ;;  %s1581_s3 = inlined_call_operand.hbm [shape: f32[2,128], index: 3, kind: input, shape index: {}]   ;;  %s1582_s4 = inlined_call_operand.vmem [shape: f32[2,4,256], index: 4, kind: input, shape index: {}]   ;;  %s1583_s5 = inlined_call_operand.vmem [shape: f32[2,2,4,16], index: 5, kind: input, shape index: {}]   ;;  %s1584_s6 = inlined_call_operand.hbm [shape: f32[2,2,4,16], index: 6, kind: input, shape index: {}]   ;;  %s1585_s7 = inlined_call_operand.hbm [shape: f32[2,8,256], index: 7, kind: output, shape index: {}]  }
   0x1   :  { %1595 = sst [smem:[#allocation18_spill]] %s1578_s0 }
   0x2   :  { %1596 = sst [smem:[#allocation19_spill]] %s1579_s1 }
   0x3   :  { %1597 = sst [smem:[#allocation20_spill]] %s1580_s2 }
   0x4   :  { %1598 = sst [smem:[#allocation21_spill]] %s1581_s3 }
   0x5   :  { %1599 = sst [smem:[#allocation22_spill]] %s1585_s7 }
   0x6   :  { %12 = vsyncpa [#allocation4], 0 }
   0x7   :  { %13 = vsyncpa [#allocation7], 0 }
   0x8   :  { %14 = vsyncpa [#allocation5], 0 }
   0x9   :  { %16 = vsyncpa [#allocation5 + $0x1], 0  ;;  %s1270_s24 = smov 0   ;;  %s1272_s25 = smov 0  }
   0xa   :  { %s1274_s26 = smov 0   ;;  %s1276_s27 = smov 0  }
   0xb   :  { %s1278_s28 = smov 0   ;;  %s1280_s29 = smov 0  }
   0xc   :  { %s1282_s30 = smov 0   ;;  %s1284_s8 = smov 0  }
   0xd LB: > { %1600 = sst [smem:[#allocation14_spill]] %s1173_s24  ;;  %s1311_s9 = sadd.s32 4294967295, %s1201_s8   ;;  %s1201_s8 = sphi %s1284_s8, %s22_s8   ;;  %s1197_s30 = sphi %s1282_s30, %s1635_s30   ;;  %s1193_s29 = sphi %s1280_s29, %s1634_s29   ;;  %s1189_s28 = sphi %s1278_s28, %s1633_s28   ;;  %s1185_s27 = sphi %s1276_s27, %s1632_s27   ;;  %s1181_s26 = sphi %s1274_s26, %s1631_s26   ;;  %s1177_s25 = sphi %s1272_s25, %s1630_s25   ;;  %s1173_s24 = sphi %s1270_s24, %s1629_s24  }
   0xe   : > { %s844_s10 = sadd.s32 4294967294, %s1201_s8   ;;  %p196_p0 = scmp.ne.s32.totalorder %s1177_s25, %s1173_s24 }
   0xf   : > { %p1586_p1 = scmp.eq.s32.totalorder %s1311_s9, 0  ;;  %p228_p3 = scmp.eq.s32.totalorder %s844_s10, 3 }
  0x10   : > { %p845_p5 = scmp.ge.s32.totalorder %s1201_s8, 1  ;;  %p235_p7 = scmp.lt.s32.totalorder %s1201_s8, 5 }
  0x11   : > { %p1320_p4 = por %p1586_p1, %p196_p0  ;;  %p1325_p6 = por %p228_p3, %p196_p0 }
  0x12   : > { %p1330_p8 = pnand %p845_p5, %p235_p7  ;;  %s1203_s14 = smov [#allocation3]  }
  0x13   : > { %s1601_s11 = scalar_select %p1320_p4, 1, 0 }
  0x14   : > { %s1602_s12 = scalar_select %p1325_p6, 1, 0 }
  0x15   : > { %s1604_s13 = scalar_select %p1330_p8, 1, 0 }
  0x16   : > { %1603 = sst [smem:[#allocation15_spill]] %s1602_s12  ;;  %s248_s15 = sshll.u32 %s1203_s14, 4  ;;  %s249_s15 = int_to_ptr.vmem [resolvable:$true] %s248_s15 }
  0x17   : > { %p889_p9 = pneg %p1330_p8  ;;  %s1204_s16 = smov [#allocation6]  }
  0x18   : > { %s265_s17 = sshll.u32 %s1204_s16, 4  ;;  %s1606_s0 = sld [smem:[#allocation18_spill]]  ;;  %s1342_s17 = int_to_ptr.vmem [resolvable:$true] %s265_s17 }
  0x19   : > { %p1338_p10 = pnand %p889_p9, %p1586_p1 }
  0x1b   : > { %p1011_p12 = pneg %p1338_p10 }
  0x1e   : > { %s1009_s21 = scalar_lea.hbm %s1606_s0, 64 }
  0x1f   : > { %p1010_p11 = scmp.ne.s32.totalorder %s1606_s0, %s1009_s21  ;;  %p1016_p3 = scmp.lt.u32.totalorder %s1009_s21, %s1606_s0 }
  0x21   : > { %p1012_p13 = pnand %p1011_p12, %p1010_p11 }
  0x23   : > { %p1013_p0 = pneg %p1012_p13 }
  0x25   : > { %p1018_p5 = pnand %p1016_p3, %p1013_p0 }
  0x27   : > { %1021 = shalt.err (!%p1018_p5)
}
  0x28   : > { %s1022_s16 = scalar_lea.vmem %s249_s15, 64  ;;  %p1030_p2 = scmp.lt.s32.totalorder %s249_s15, %s249_s15 }
  0x29   : > { %p1023_p7 = scmp.ne.s32.totalorder %s249_s15, %s1022_s16  ;;  %p1031_p6 = scmp.lt.s32.totalorder %s1022_s16, %s1022_s16 }
  0x2b   : > { %p1025_p9 = pnand %p1023_p7, %p1011_p12  ;;  %p1032_p4 = por %p1031_p6, %p1030_p2 }
  0x2d   : > { %p1026_p1 = pneg %p1025_p9 }
  0x2f   : > { %p1033_p8 = pnand %p1032_p4, %p1026_p1 }
  0x31   : > { %1036 = shalt.err (!%p1033_p8)
}
  0x32   : > { %892 = dma.hbm_to_vmem [thread:$0]  (!%p1338_p10), %s1606_s0, 64, %s249_s15, [#allocation4]  }
  0x33   : > { %s1607_s3 = sld [smem:[#allocation21_spill]] }
  0x39   : > { %s1037_s23 = scalar_lea.hbm %s1607_s3, 32 }
  0x3a   : > { %p1038_p11 = scmp.ne.s32.totalorder %s1607_s3, %s1037_s23  ;;  %p1044_p4 = scmp.lt.u32.totalorder %s1037_s23, %s1607_s3 }
  0x3c   : > { %p1040_p2 = pnand %p1038_p11, %p1011_p12 }
  0x3e   : > { %p1041_p1 = pneg %p1040_p2 }
  0x40   : > { %p1046_p6 = pnand %p1044_p4, %p1041_p1 }
  0x42   : > { %1049 = shalt.err (!%p1046_p6)
}
  0x43   : > { %s1050_s15 = scalar_lea.vmem %s1342_s17, 32  ;;  %p1058_p3 = scmp.lt.s32.totalorder %s1342_s17, %s1342_s17 }
  0x44   : > { %p1051_p8 = scmp.ne.s32.totalorder %s1342_s17, %s1050_s15  ;;  %p1059_p5 = scmp.lt.s32.totalorder %s1050_s15, %s1050_s15 }
  0x46   : > { %p1053_p13 = pnand %p1051_p8, %p1011_p12  ;;  %p1060_p7 = por %p1059_p5, %p1058_p3 }
  0x48   : > { %p1054_p0 = pneg %p1053_p13 }
  0x4a   : > { %p1061_p9 = pnand %p1060_p7, %p1054_p0 }
  0x4c   : > { %1064 = shalt.err (!%p1061_p9)
}
  0x4d   : > { %895 = dma.hbm_to_vmem [thread:$0]  (!%p1338_p10), %s1607_s3, 32, %s1342_s17, [#allocation7]  }
  0x4e   : > { %s31_s20 = sadd.s32 1, %s1193_s29  ;;  %s34_s18 = sadd.s32 1, %s1197_s30 }
  0x4f   : > { %p32_p12 = scmp.ge.s32.totalorder %s31_s20, 2  ;;  %s183_s21 = sadd.s32 1, %s1181_s26 }
  0x50   : > { %p190_p11 = scmp.ne.s32.totalorder %s1181_s26, %s1177_s25  ;;  %p191_p2 = scmp.eq.s32.totalorder %s1201_s8, 0 }
  0x51   : > { %s1637_s20 = smov (%p32_p12, %s31_s20), 0  ;;  %s1639_s18 = smov (!%p32_p12, %s34_s18), %s1197_s30 }
  0x52   : > { %1608 = sst [smem:[#allocation16_spill]] %s1637_s20  ;;  %s179_s22 = ssub.s32 %s1193_s29, %s1637_s20 }
  0x53   : > { %p1402_p1 = por %p191_p2, %p190_p11  ;;  %p36_p10 = scmp.ge.s32.totalorder %s1639_s18, 2 }
  0x54   : > { %p1610_p4 = scmp.eq.s32.totalorder %s1311_s9, 3  ;;  %p906_p8 = scmp.lt.s32.totalorder %s1201_s8, 4 }
  0x55   : > { %s298_s10 = sand.u32 1, %s1201_s8   ;;  %s1641_s18 = smov (%p36_p10, %s1639_s18), 0 }
  0x56   : > { %p1408_p6 = por %p1610_p4, %p190_p11  ;;  %s300_s14 = sand.u32 1, %s1181_s26  }
  0x57   : > { %s178_s16 = ssub.s32 %s1197_s30, %s1641_s18  ;;  %s849_s15 = sshll.u32 %s300_s14, 2 }
  0x58   : > { %s1611_s17 = scalar_select %p1408_p6, 1, 0 }
  0x59   : > { %s180_s12 = sor.u32 %s179_s22, %s178_s16  ;;  %s850_s19 = sshll.u32 %s1197_s30, 1 }
  0x5a   : > { %1612 = sst [smem:[#allocation17_spill]] %s1611_s17  ;;  %p181_p13 = scmp.eq.s32.totalorder %s180_s12, 0 }
  0x5b   : > { %s307_s0 = sadd.s32 %s1193_s29, %s850_s19  ;;  %s302_s3 = scalar_lea.vmem [#allocation8], %s849_s15 }
  0x5c   : > { %s311_s20 = sshll.u32 %s302_s3, 4  ;;  %s851_s7 = sshll.u32 %s307_s0, 6  ;;  %s1424_s20 = int_to_ptr.vmem [resolvable:$true] %s311_s20 }
  0x5d   : > { %s1422_s24 = scalar_select %p181_p13, %s1181_s26, %s183_s21  }
  0x5e   : > { %s1429_s2 = scalar_lea.hbm %s1584_s6, %s851_s7  ;;  %p1435_p0 = pnand %p906_p8, %p1402_p1 }
  0x5f   : > { %s299_s0 = scalar_lea.sflag [#allocation4], %s298_s10  ;;  %s1065_s3 = scalar_lea.hbm %s1429_s2, 64 }
  0x60   : > { %p1066_p3 = scmp.ne.s32.totalorder %s1429_s2, %s1065_s3  ;;  %p1067_p5 = pneg %p1435_p0 }
  0x61   : > { %s1070_s21 = scalar_lea.hbm %s1584_s6, 256  ;;  %p1071_p12 = scmp.lt.u32.totalorder %s1429_s2, %s1584_s6 }
  0x62   : > { %p1068_p7 = pnand %p1067_p5, %p1066_p3  ;;  %p1072_p11 = scmp.lt.u32.totalorder %s1070_s21, %s1065_s3 }
  0x63   : > { %p1074_p1 = scmp.lt.u32.totalorder %s1065_s3, %s1429_s2 }
  0x64   : > { %p1069_p9 = pneg %p1068_p7  ;;  %p1073_p2 = por %p1072_p11, %p1071_p12 }
  0x66   : > { %p1075_p10 = por %p1074_p1, %p1073_p2 }
  0x68   : > { %p1076_p4 = pnand %p1075_p10, %p1069_p9 }
  0x6a   : > { %1079 = shalt.err (!%p1076_p4)
}
  0x6b   : > { %s1080_s10 = scalar_lea.vmem %s1424_s20, 64  ;;  %s1205_s14 = smov [#allocation8]  }
  0x6c   : > { %p1081_p8 = scmp.ne.s32.totalorder %s1424_s20, %s1080_s10  ;;  %s1085_s16 = sshll.u32 %s1205_s14, 4  ;;  %s1086_s16 = int_to_ptr.vmem [resolvable:$false] %s1085_s16 }
  0x6d   : > { %s1087_s15 = scalar_lea.vmem %s1086_s16, 128  ;;  %p1088_p7 = scmp.lt.s32.totalorder %s1424_s20, %s1086_s16 }
  0x6e   : > { %p1083_p13 = pnand %p1081_p8, %p1067_p5  ;;  %p1089_p12 = scmp.lt.s32.totalorder %s1087_s15, %s1080_s10 }
  0x70   : > { %p1084_p3 = pneg %p1083_p13  ;;  %p1090_p11 = por %p1089_p12, %p1088_p7 }
  0x72   : > { %p1091_p2 = pnand %p1090_p11, %p1084_p3 }
  0x74   : > { %1094 = shalt.err (!%p1091_p2)
}
  0x75   : > { %899 = dma.hbm_to_vmem [thread:$0]  (!%p1435_p0), %s1429_s2, 64, %s1424_s20, %s299_s0  }
  0x76   : > { %p1614_p9 = scmp.ne.s32.totalorder %s1604_s13, 0 }
  0x77   : > { %p1615_p5 = scmp.eq.s32.totalorder (!%p1614_p9), %s1311_s9, 0 }
  0x78   : > { %320 = sbr.rel (%p1614_p9) target bundleno = 774 (0x306), region = 48 }
  0x7f   : > { %1156 = dma.done.wait (%p1615_p5), [#allocation4], 64   ;;  %p1616_p1 = pmov %p1615_p5 }
  0x81   : > { %1158 = vsyncadd (%p1616_p1), [#allocation4], 4294967232  ;;  %p1617_p10 = pmov %p1616_p1 }
  0x82   : > { %p1618_p4 = pmov %p1616_p1 }
  0x83   : > { %1160 = dma.done.wait (%p1617_p10), [#allocation7], 32  }
  0x84   : > { %1162 = vsyncadd (%p1618_p4), [#allocation7], 4294967264  ;;  %s330_s12 = sand.u32 1, %s1311_s9   ;;  %s1476_s2 = sand.u32 1, %s1177_s25  }
  0x85   : > { %s855_s13 = sshll.u32 %s1476_s2, 2  ;;  %s331_s20 = scalar_lea.sflag [#allocation4], %s330_s12 }
  0x86   : > { %s334_s19 = scalar_lea.vmem [#allocation8], %s855_s13  ;;  %p1619_p0 = scmp.ne.s32.totalorder %s1601_s11, 0 }
  0x88   : > { %1164 = dma.done.wait (%p1619_p0), %s331_s20, 64  }
  0x89   : > { %1166 = vsyncadd (%p1619_p0), %s331_s20, 4294967232  ;;  %v1206_v0 = vmov 2   ;;  %v1207_v1 = vmov 1   ;;  %p381_p8 = scmp.lt.s32.totalorder %s1189_s28, 1  ;;  %p383_p13 = scmp.lt.s32.totalorder %s1185_s27, 1  ;;  %vm407_vm0 = vcmask 125952  }
  0x8a   : > { %1000 = vset.pattern.permute.xlu1 %v1206_v0  ;;  %999 = vset.pattern.permute.xlu0 %v1207_v1  ;;  %v437_v2 = vld [vmem:[#allocation3] sm:$0xf]  ;;  %v406_v6 = vld [vmem:[%s334_s19] sm:$0xf]  ;;  %vm411_vm1 = vcmask 134272   ;;  %v1208_v7 = vmov 3  }
  0x8b   : > { %s382_s9 = scalar_select %p381_p8, %s1189_s28, 1  ;;  %453 = vperm.xlu1 %1000, %v437_v2   ;;  %440 = vperm.xlu0 %999, %v437_v2   ;;  %v478_v3 = vld [vmem:[#allocation3] sm:$0xf]  ;;  %408 = vst.msk [vmem:[#allocation2 + $0x8] sm:$0xf] %vm407_vm0, %v406_v6  ;;  %v1210_v8 = vmov 4  }
  0x8c   : > { %s384_s22 = scalar_select %p383_p13, %s1185_s27, 1  ;;  %v1211_v9 = vmov 0.0   ;;  %v862_v10 = vld [vmem:[#allocation6 + $0x1] ss:$0 sm:$0xff]  ;;  %v500_v11 = vld [vmem:[#allocation3] sm:$0xf] }
  0x8d   : > { %s857_s0 = sshll.u32 %s382_s9, 1  ;;  %s1209_s14 = smov 112   ;;  %412 = vst.msk [vmem:[#allocation2 + $0x8] sm:$0xf] %vm411_vm1, %v1211_v9  ;;  %872 = vmatprep.subr.mxu0 %v1211_v9  ;;  %v1213_v12 = vmov 5   ;;  %v1214_v14 = vmov 6  }
  0x8e   : > { %s386_s3 = sadd.s32 %s857_s0, %s384_s22  ;;  %s1212_s16 = smov 113   ;;  %v536_v13 = vld [vmem:[#allocation3] sm:$0xf]  ;;  %v861_v15 = vld [vmem:[#allocation6] ss:$0 sm:$0xff]  ;;  %v1216_v17 = vmov 8  }
  0x8f   : > { %s858_s1 = sshll.u32 %s386_s3, 2  ;;  %1001 = vset.pattern.permute.xlu1 %v1208_v7  ;;  %1002 = vset.pattern.permute.xlu0 %v1210_v8  ;;  %s1215_s15 = smov 127   ;;  %v559_v16 = vld [vmem:[#allocation3] sm:$0xf]  ;;  %v1217_v18 = vmov 7   ;;  %v1219_v20 = vmov 0  }
  0x90   : > { %s388_s21 = scalar_lea.vmem %s1582_s4, %s858_s1  ;;  %s396_s10 = scalar_lea.vmem %s1583_s5, %s858_s1  ;;  %481 = vperm.xlu1 %1001, %v478_v3   ;;  %v416_v19 = vld [vmem:[#allocation3] sm:$0xf]  ;;  %vm402_vm2 = vcmask 1044352   ;;  %vm409_vm3 = vcmask 913272   ;;  %vm465_vm4 = vcmask 924672   ;;  %vm448_vm5 = vcmask 1039360  }
  0x91   : > { %v397_v4 = vld [vmem:[%s396_s10] sm:$0xf]  ;;  %s1218_s12 = smov 1   ;;  %s1220_s13 = smov 15   ;;  %vm523_vm6 = vcmask 7168   ;;  %vm546_vm7 = vcmask 121856  }
  0x92   : > { %v404_v5 = vld [vmem:[%s388_s21] sm:$0xf]  ;;  %399 = vrot.lane.b32.xlu0 %v397_v4, %s1209_s14  ;;  %s1221_s20 = smov 17   ;;  %s1222_s19 = smov 111   ;;  %vm582_vm8 = vcmask 138240   ;;  %vm431_vm9 = vcmask 908288  }
  0x93   : > { %405 = vst [vmem:[#allocation2 + $0x4] sm:$0xf] %v404_v5  ;;  %s1223_s9 = smov 126   ;;  %s1224_s22 = smov 110   ;;  %vm473_vm10 = vcmask 1031168   ;;  %vm495_vm11 = vcmask 916480  }
  0x94   : > { %462 = vrot.lane.b32.xlu1 %v862_v10, %s1212_s16  ;;  %s1225_s0 = smov 95   ;;  %s1226_s3 = smov 96   ;;  %vm531_vm12 = vcmask 900096   ;;  %vm554_vm13 = vcmask 785408   ;;  %vm1228_vm14 = vmmov 0   ;;  %vm570_vm15 = vcmask 777216  }
  0x95   : > { %1003 = vset.pattern.permute.xlu1 %v1213_v12  ;;  %s1227_s1 = smov 94   ;;  %874 = vmatprep.mubr.msk.f32.mxu0 %vm1228_vm14, %v1211_v9  ;;  %vm590_vm0 = vcmask 769024   ;;  %s1620_s21 = sld [smem:[#allocation20_spill]]  ;;  %vm612_vm1 = vcmask 1043456  }
  0x96   : > { %503 = vperm.xlu0 %1002, %v500_v11   ;;  %s1621_s10 = sld [smem:[#allocation19_spill]]  ;;  %s866_s16 = sshll.u32 %s1189_s28, 1 }
  0x98   : > { %516 = vperm.xlu1 %1003, %v500_v11  }
  0x9a   : > { %1004 = vset.pattern.permute.xlu0 %v1214_v14  ;;  %v499_v32 = vld [vmem:[#allocation2 + $0x4] sm:$0xf] }
  0x9b   : > { %539 = vperm.xlu0 %1004, %v536_v13   ;;  %v514_v39 = vld [vmem:[#allocation2 + $0x4] sm:$0xff] }
  0x9c   : > { %485 = vrot.lane.b32.xlu1 %v861_v15, %s1215_s15 }
  0x9d   : > { %1005 = vset.pattern.permute.xlu1 %v1217_v18 }
  0x9f   : > { %1006 = vset.pattern.permute.xlu0 %v1216_v17 }
  0xa0   : > { %575 = vperm.xlu0 %1006, %v559_v16   ;;  %520 = vrot.lane.b32.xlu1 %v862_v10, %s1218_s12  ;;  %s699_s12 = sadd.s32 %s1185_s27, %s866_s16  ;;  %s688_s27 = scalar_lea.sflag [#allocation5], %s1476_s2 }
  0xa4   : > { %1007 = vset.pattern.permute.xlu0 %v1219_v20  ;;  %562 = vperm.xlu1 %1005, %v559_v16  }
  0xa5   : > { %419 = vperm.xlu0 %1007, %v416_v19  }
  0xa8   : > { %543 = vrot.lane.b32.xlu1 %v861_v15, %s1220_s13  ;;  %s867_s13 = sshll.u32 %s699_s12, 7 }
  0xa9   : > { %1008 = vset.pattern.permute.xlu1 %v1219_v20 }
  0xac   : > { %579 = vrot.lane.b32.xlu1 %v862_v10, %s1221_s20 }
  0xb0   : > { %428 = vrot.lane.b32.xlu1 %v861_v15, %s1222_s19 }
 0x10a   : > { %v454_v21 = vpop.permute.xlu1 %453  ;;  %v441_v22 = vpop.permute.xlu0 %440 }
 0x10e   : > { %v400_v23 = vpop.permute.xlu0 %399 }
 0x10f   : > { %403 = vst.msk [vmem:[#allocation2] sm:$0xf] %vm402_vm2, %v400_v23  ;;  %v482_v24 = vpop.permute.xlu1 %481  ;;  %vm608_vm2 = vcmask 31744  }
 0x110   : > { %410 = vst.msk [vmem:[#allocation2] sm:$0xf] %vm409_vm3, %v1211_v9  ;;  %v595_v9 = vld [vmem:[%s1620_s21] sm:$0xff] }
 0x113   : > { %v463_v25 = vpop.permute.xlu1 %462 }
 0x114   : > { %v464_v26 = vrot.slane %v463_v25, 4 }
 0x115   : > { %v504_v33 = vpop.permute.xlu0 %503 }
 0x116   : > { %v466_v31 = vsel %vm465_vm4, %v464_v26, %v463_v25  ;;  %v506_v37 = vmul.f32 %v504_v33, %v499_v32 }
 0x117   : > { %v477_v27 = vld [vmem:[#allocation2] sm:$0xff]  ;;  %v517_v28 = vpop.permute.xlu1 %516 }
 0x118   : > { %v456_v29 = vmul.f32 %v477_v27, %v454_v21  ;;  %v443_v30 = vmul.f32 %v477_v27, %v441_v22  ;;  %v484_v38 = vmul.f32 %v482_v24, %v477_v27  ;;  %v519_v44 = vmul.f32 %v517_v28, %v514_v39 }
 0x11a   : > { %v468_v34 = vmul.f32 %v466_v31, %v456_v29  ;;  %445 = vrot.lane.b32.xlu1 %v443_v30, %s1215_s15  ;;  %v540_v46 = vpop.permute.xlu0 %539 }
 0x11b   : > { %v486_v35 = vpop.permute.xlu1 %485  ;;  %v542_v51 = vmul.f32 %v540_v46, %v514_v39 }
 0x11c   : > { %v487_v36 = vrot.slane %v486_v35, 4  ;;  %470 = vrot.lane.b32.xlu0 %v468_v34, %s1223_s9 }
 0x11e   : > { %v488_v40 = vsel %vm448_vm5, %v487_v36, %v486_v35 }
 0x11f   : > { %v490_v41 = vmul.f32 %v488_v40, %v484_v38  ;;  %v521_v42 = vpop.permute.xlu1 %520  ;;  %v576_v53 = vpop.permute.xlu0 %575 }
 0x120   : > { %v522_v43 = vrot.slane %v521_v42, 4  ;;  %508 = vrot.lane.b32.xlu0 %v506_v37, %s1222_s19  ;;  %v578_v57 = vmul.f32 %v576_v53, %v514_v39 }
 0x121   : > { %492 = vrot.lane.b32.xlu1 %v490_v41, %s1209_s14  ;;  %s856_s14 = sshll.u32 %s1476_s2, 3 }
 0x122   : > { %v524_v45 = vsel %vm523_vm6, %v522_v43, %v521_v42 }
 0x123   : > { %v526_v47 = vmul.f32 %v524_v45, %v519_v44  ;;  %v563_v48 = vpop.permute.xlu1 %562 }
 0x124   : > { %v565_v49 = vmul.f32 %v563_v48, %v514_v39  ;;  %v420_v63 = vpop.permute.xlu0 %419  ;;  %v594_v39 = vld [vmem:[%s1621_s10] sm:$0xff] }
 0x125   : > { %528 = vrot.lane.b32.xlu1 %v526_v47, %s1224_s22  ;;  %v422_v0 = vmul.f32 %v477_v27, %v420_v63 }
 0x127   : > { %v544_v50 = vpop.permute.xlu1 %543 }
 0x128   : > { %v545_v52 = vrot.slane %v544_v50, 4 }
 0x129   : > { %567 = vrot.lane.b32.xlu1 %v565_v49, %s1225_s0  ;;  %s1623_s0 = sld [smem:[#allocation22_spill]] }
 0x12a   : > { %v547_v54 = vsel %vm546_vm7, %v545_v52, %v544_v50 }
 0x12b   : > { %v549_v55 = vmul.f32 %v547_v54, %v542_v51  ;;  %v580_v56 = vpop.permute.xlu1 %579 }
 0x12c   : > { %v581_v58 = vrot.slane %v580_v56, 4 }
 0x12d   : > { %551 = vrot.lane.b32.xlu0 %v549_v55, %s1226_s3 }
 0x12e   : > { %v583_v59 = vsel %vm582_vm8, %v581_v58, %v580_v56 }
 0x12f   : > { %v585_v60 = vmul.f32 %v583_v59, %v578_v57  ;;  %v429_v61 = vpop.permute.xlu1 %428  ;;  %s1524_s3 = scalar_lea.hbm %s1623_s0, %s867_s13 }
 0x130   : > { %v430_v62 = vrot.slane %v429_v61, 4 }
 0x131   : > { %587 = vrot.lane.b32.xlu0 %v585_v60, %s1227_s1  ;;  %s1229_s1 = smov [#allocation9]  }
 0x132   : > { %v432_v1 = vsel %vm431_vm9, %v430_v62, %v429_v61  ;;  %s1099_s11 = sshll.u32 %s1229_s1, 4  ;;  %s1100_s11 = int_to_ptr.vmem [resolvable:$false] %s1099_s11 }
 0x133   : > { %v434_v5 = vmul.f32 %v432_v1, %v422_v0  ;;  %s1101_s7 = scalar_lea.vmem %s1100_s11, 256 }
 0x18c   : > { %v446_v2 = vpop.permute.xlu1 %445 }
 0x18d   : > { %v447_v3 = vrot.slane %v446_v2, 4 }
 0x18e   : > { %v471_v4 = vpop.permute.xlu0 %470 }
 0x18f   : > { %v449_v6 = vsel %vm448_vm5, %v446_v2, %v447_v3  ;;  %v472_v7 = vrot.slane %v471_v4, 4 }
 0x190   : > { %v451_v8 = vadd.f32 %v449_v6, %v434_v5 }
 0x191   : > { %v474_v12 = vsel %vm473_vm10, %v471_v4, %v472_v7 }
 0x192   : > { %v509_v11 = vpop.permute.xlu0 %508  ;;  %v476_v16 = vadd.f32 %v474_v12, %v451_v8 }
 0x193   : > { %v493_v10 = vpop.permute.xlu1 %492  ;;  %v510_v15 = vrot.slane %v509_v11, 4 }
 0x194   : > { %v494_v13 = vrot.slane %v493_v10, 4 }
 0x195   : > { %v511_v19 = vsel %vm431_vm9, %v510_v15, %v509_v11 }
 0x196   : > { %v496_v14 = vsel %vm495_vm11, %v493_v10, %v494_v13 }
 0x197   : > { %v529_v17 = vpop.permute.xlu1 %528  ;;  %v498_v18 = vadd.f32 %v496_v14, %v476_v16 }
 0x198   : > { %v530_v20 = vrot.slane %v529_v17, 4 }
 0x199   : > { %v513_v21 = vadd.f32 %v511_v19, %v498_v18 }
 0x19a   : > { %v532_v23 = vsel %vm531_vm12, %v530_v20, %v529_v17 }
 0x19b   : > { %v568_v22 = vpop.permute.xlu1 %567  ;;  %v534_v27 = vadd.f32 %v532_v23, %v513_v21 }
 0x19c   : > { %v569_v25 = vrot.slane %v568_v22, 4 }
 0x19e   : > { %v571_v31 = vsel %vm570_vm15, %v569_v25, %v568_v22 }
 0x19f   : > { %v552_v24 = vpop.permute.xlu0 %551 }
 0x1a0   : > { %v553_v26 = vrot.slane %v552_v24, 4 }
 0x1a2   : > { %v555_v28 = vsel %vm554_vm13, %v553_v26, %v552_v24 }
 0x1a3   : > { %v557_v29 = vadd.f32 %v555_v28, %v534_v27  ;;  %v588_v30 = vpop.permute.xlu0 %587 }
 0x1a4   : > { %v589_v32 = vrot.slane %v588_v30, 4 }
 0x1a5   : > { %v573_v33 = vadd.f32 %v571_v31, %v557_v29 }
 0x1a6   : > { %v591_v34 = vsel %vm590_vm0, %v589_v32, %v588_v30 }
 0x1a7   : > { %v593_v35 = vadd.f32 %v591_v34, %v573_v33 }
 0x1a9   : > { %603 = vrot.lane.b32.xlu1 %v593_v35, %s1221_s20  ;;  %v602_v36 = vcombine.high %v593_v35, %v593_v35 }
 0x1ab   : > { %605 = vrot.lane.b32.xlu0 %v602_v36, %s1221_s20  ;;  %s380_s20 = scalar_lea.vmem [#allocation9], %s856_s14 }
 0x1ac   : > { %s703_s19 = sshll.u32 %s380_s20, 4  ;;  %s1526_s19 = int_to_ptr.vmem [resolvable:$true] %s703_s19 }
 0x1ad   : > { %598 = vperm.xlu1 %1008, %v595_v9   ;;  %s1095_s28 = scalar_lea.vmem %s1526_s19, 128  ;;  %p1102_p11 = scmp.lt.s32.totalorder %s1526_s19, %s1100_s11 }
 0x1ae   : > { %p1096_p3 = scmp.ne.s32.totalorder %s1526_s19, %s1095_s28  ;;  %p1103_p2 = scmp.lt.s32.totalorder %s1101_s7, %s1095_s28 }
 0x1b0   : > { %p1097_p7 = pnand %p1096_p3, %p1408_p6  ;;  %p1104_p9 = por %p1103_p2, %p1102_p11 }
 0x1b2   : > { %p1098_p12 = pneg %p1097_p7 }
 0x1b4   : > { %p1105_p5 = pnand %p1104_p9, %p1098_p12 }
 0x21b   : > { %v604_v37 = vpop.permute.xlu1 %603 }
 0x21d   : > { %v606_v38 = vpop.permute.xlu0 %605 }
 0x21e   : > { %v607_v40 = vsel %vm582_vm8, %v604_v37, %v606_v38 }
 0x21f   : > { %873 = vmatpush3.msk.msra.mxu0 %vm612_vm1, %v607_v40 }
 0x220   : > { %875 = vmatmul.mubr.msk.f32.vlgmr.msra.gmra.mrb[0].mxu0 %vm608_vm2, %v594_v39 }
 0x22c   : > { %v599_v41 = vpop.permute.xlu1 %598 }
 0x2f3   : > { %v681_v42 = vpop.f32.mrb[0].mxu0 }
 0x2f4   : > { %v682_v43 = vadd.f32 %v681_v42, %v599_v41  ;;  %v876_v44 = vpop.f32.mrb[1].mxu0 }
 0x2f6   : > { %v685_v45 = vmax.f32 %v682_v43, 0.0 }
 0x2f8   : > { %686 = vst [vmem:[%s380_s20] sm:$0xff] %v685_v45 }
 0x2f9   : > { %1108 = shalt.err (!%p1105_p5)
}
 0x2fa   : > { %s1109_s2 = scalar_lea.hbm %s1524_s3, 128  ;;  %s1113_s17 = scalar_lea.hbm %s1623_s0, 512 }
 0x2fb   : > { %p1110_p1 = scmp.ne.s32.totalorder %s1524_s3, %s1109_s2  ;;  %p1114_p0 = scmp.lt.u32.totalorder %s1524_s3, %s1623_s0 }
 0x2fc   : > { %p1115_p8 = scmp.lt.u32.totalorder %s1113_s17, %s1109_s2  ;;  %p1117_p3 = scmp.lt.u32.totalorder %s1109_s2, %s1524_s3 }
 0x2fd   : > { %p1111_p10 = pnand %p1110_p1, %p1408_p6 }
 0x2fe   : > { %p1116_p13 = por %p1115_p8, %p1114_p0 }
 0x2ff   : > { %p1112_p4 = pneg %p1111_p10 }
 0x300   : > { %p1118_p7 = por %p1117_p3, %p1116_p13 }
 0x302   : > { %p1119_p12 = pnand %p1118_p7, %p1112_p4 }
 0x304   : > { %1122 = shalt.err (!%p1119_p12)
}
 0x305   : > { %887 = dma.vmem_to_hbm [thread:$0]  (%p1408_p6), %s1526_s19, 128, %s1524_s3, %s688_s27  }
 0x306 PF: > { %s1624_s16 = sld [smem:[#allocation14_spill]]  ;;  %s1625_s12 = sld [smem:[#allocation15_spill]] }
 0x307   : > { %p909_p11 = scmp.ge.s32.totalorder %s1201_s8, 2 }
 0x30c   : > { %s715_s13 = sand.u32 1, %s1624_s16   ;;  %p1626_p2 = scmp.ne.s32.totalorder %s1625_s12, 0 }
 0x30d   : > { %s716_s20 = scalar_lea.sflag [#allocation5], %s715_s13 }
 0x30e   : > { %p901_p9 = pnand %p909_p11, %p1626_p2 }
 0x310   : > { %1168 = dma.done.wait (!%p901_p9), %s716_s20, 128  }
 0x311   : > { %1170 = vsyncadd (!%p901_p9), %s716_s20, 4294967168  ;;  %s22_s8 = sadd.s32 1, %s1201_s8   ;;  %s1627_s15 = smov %s1422_s24 }
 0x312   : > { %p19_p5 = scmp.ge.s32.totalorder %s22_s8, 6   ;;  %s1628_s19 = sld [smem:[#allocation16_spill]] }
 0x313   : > { %s1629_s24 = smov %s1177_s25  ;;  %s1630_s25 = smov %s1181_s26 }
 0x314   : > { %s1631_s26 = smov %s1627_s15  ;;  %s1632_s27 = smov %s1193_s29 }
 0x315   : > { %s1633_s28 = smov %s1197_s30  ;;  %s1635_s30 = smov %s1641_s18 }
 0x316   :  { %21 = sbr.rel (!%p19_p5) target bundleno = 13 (0xd), region = 106 }
 0x318   : > { %s1634_s29 = smov %s1628_s19 }
 0x31d   :  { %721 = vsyncpa [#allocation4], 1 }
 0x31e   :  { %723 = vsyncpa [#allocation4 + $0x1], 1 }
 0x31f   :  { %724 = vsyncpa [#allocation7], 1 }
 0x320   :  { %725 = vsyncpa [#allocation5], 1 }
 0x321   :  { %727 = vsyncpa [#allocation5 + $0x1], 1 }

</bundles_post_ra>
